<compile_context>
chip_gen: v5e
topology: v5e:2x2
jax: 0.10.0
libtpu: 0.0.40
codegen_flags: <defaults>
</compile_context>

<pallas_src>
import functools

import jax
import jax.numpy as jnp
import numpy as np
from jax.experimental import pallas as pl
from jax.experimental.pallas import tpu as pltpu


def _fused_kernel(p_ref, wd_ref, deg_ref, nodes_ref, idx_ref, out_ref, *,
                  k_pos, k_neg, k_dpos, k_dneg):
    """sigmoid + degree MSE + both contrastive losses, all in VMEM."""
    z = jax.nn.sigmoid(p_ref[...].astype(jnp.float32))            # (N, d)
    n_nodes, d = z.shape
    b = nodes_ref.shape[0]

    # ---- degree loss: VPU multiply + lane reduce (no 1-wide MXU matmul) ----
    deg_prime = jnp.sum(z * wd_ref[...], axis=1, keepdims=True)   # (N, 1)
    diff = deg_prime - deg_ref[...]
    l_deg = jnp.sum(diff * diff, axis=0, keepdims=True) / n_nodes  # (1, 1)

    # ---- gather the B selected rows via a tiny one-hot matmul -------------
    node_iota = jax.lax.broadcasted_iota(jnp.int32, (b, n_nodes), 1)
    onehot_nodes = (nodes_ref[...] == node_iota).astype(jnp.float32)   # (B, N)
    zi = jnp.dot(onehot_nodes, z, preferred_element_type=jnp.float32)  # (B, d)

    # ---- hamming distance of every selected node to ALL nodes -------------
    # broadcast computed exactly once and reused by all four weightings.
    h_all = jnp.sum(jnp.abs(zi[:, None, :] - z[None, :, :]), axis=-1)  # (B, N)

    # ---- per-row sample multiplicities (in-kernel "gather" weights) -------
    idx = idx_ref[...]                                             # (B, K_total)
    n_col = jax.lax.broadcasted_iota(jnp.int32, (n_nodes, 1), 0)   # (N, 1)
    n_col3 = n_col[None, :, :]                                     # (1, N, 1)

    def counts(sl):
        # sl: (B, K) int32  ->  (B, N) float32 multiplicity of each node id.
        eq = (sl[:, None, :] == n_col3).astype(jnp.float32)        # (B, N, K)
        return jnp.sum(eq, axis=-1)                                # lane reduce

    c_pos = counts(idx[:, :k_pos])
    c_neg = counts(idx[:, k_pos:k_pos + k_neg])
    c_dpos = counts(idx[:, k_pos + k_neg:k_pos + k_neg + k_dpos])
    c_dneg = counts(idx[:, k_pos + k_neg + k_dpos:k_pos + k_neg + k_dpos + k_dneg])

    def contrast_loss(cp, cn, kp):
        mean_pos = jnp.sum(cp * h_all, axis=-1, keepdims=True) / kp        # (B, 1)
        # stable log(sum_k exp(h[neg_k])) = m + log(sum_n cn * exp(h - m))
        masked = jnp.where(cn > 0, h_all, -jnp.inf)
        m = jnp.max(masked, axis=-1, keepdims=True)                        # (B, 1)
        e = jnp.where(cn > 0, jnp.exp(h_all - m), 0.0)
        log_sum_neg = m + jnp.log(jnp.sum(cn * e, axis=-1, keepdims=True))  # (B, 1)
        per_node = log_sum_neg - mean_pos                                  # (B, 1)
        return jnp.sum(per_node, axis=0, keepdims=True)                    # (1, 1)

    l_adj = contrast_loss(c_pos, c_neg, k_pos)
    l_deg_dist = contrast_loss(c_dpos, c_dneg, k_dpos)

    # ---- pack the three losses into one lane-dense row --------------------
    lane = jax.lax.broadcasted_iota(jnp.int32, (1, out_ref.shape[1]), 1)
    out_ref[...] = (l_adj * (lane == 0).astype(jnp.float32)
                    + l_deg_dist * (lane == 1).astype(jnp.float32)
                    + l_deg * (lane == 2).astype(jnp.float32))


def position_encode_forward(P, W_d, deg_vec, nodes,
                            pos_idx, neg_idx, deg_pos_idx, deg_neg_idx):
    N, d = P.shape
    B = nodes.shape[0]
    k_pos, k_neg = pos_idx.shape[1], neg_idx.shape[1]
    k_dpos, k_dneg = deg_pos_idx.shape[1], deg_neg_idx.shape[1]

    # Glue: concatenate the four fixed-size index tensors into one VMEM input
    # (single small DMA instead of five); sliced with static offsets in-kernel.
    idx_all = jnp.concatenate(
        [pos_idx, neg_idx, deg_pos_idx, deg_neg_idx], axis=1).astype(jnp.int32)

    def vmem():
        return pl.BlockSpec(memory_space=pltpu.MemorySpace.VMEM)

    kernel = functools.partial(_fused_kernel, k_pos=k_pos, k_neg=k_neg,
                               k_dpos=k_dpos, k_dneg=k_dneg)

    out = pl.pallas_call(
        kernel,
        out_shape=jax.ShapeDtypeStruct((1, 128), jnp.float32),
        in_specs=[vmem()] * 5,
        out_specs=vmem(),
    )(P.astype(jnp.float32),
      W_d.reshape(1, d).astype(jnp.float32),
      deg_vec.reshape(N, 1).astype(jnp.float32),
      nodes.reshape(B, 1).astype(jnp.int32),
      idx_all)

    return out[0, 0], out[0, 1], out[0, 2]


def reference_forward(P, W_d, deg_vec, nodes, pos_idx, neg_idx,
                      deg_pos_idx, deg_neg_idx):
    """Pure-JAX reference mirroring the PyTorch forward (test=False)."""
    Z = jax.nn.sigmoid(P.astype(jnp.float32))
    deg_prime = Z @ W_d.astype(jnp.float32)
    l_deg = jnp.mean((deg_prime - deg_vec.astype(jnp.float32)) ** 2)

    def loss(pidx, nidx):
        zi = Z[nodes]                                                 # (B, d)
        h_pos = jnp.sum(jnp.abs(zi[:, None, :] - Z[pidx]), axis=-1)   # (B, Kp)
        h_neg = jnp.sum(jnp.abs(zi[:, None, :] - Z[nidx]), axis=-1)   # (B, Kn)
        per_node = jax.nn.logsumexp(h_neg, axis=-1) - jnp.mean(h_pos, axis=-1)
        return jnp.sum(per_node)

    return loss(pos_idx, neg_idx), loss(deg_pos_idx, deg_neg_idx), l_deg


if __name__ == "__main__":
    N, d = 16, 8            # graph nodes, embedding dim (P: torch.randn(N, d))
    B = 4                   # number of selected nodes
    K_pos, K_neg = 3, 6     # adjacency positive / negative samples per node
    K_dpos, K_dneg = 2, 5   # degree-distribution positive / negative samples

    key = jax.random.PRNGKey(0)
    k_p, k_w, k_deg, k_nodes, k_pos, k_neg, k_dpos, k_dneg = jax.random.split(key, 8)

    P = jax.random.normal(k_p, (N, d), dtype=jnp.float32)       # nn.Parameter(torch.randn(N, d))
    W_d = jax.random.normal(k_w, (d,), dtype=jnp.float32)       # nn.Parameter(torch.randn(d))
    deg_vec = jax.random.uniform(k_deg, (N,), dtype=jnp.float32,
                                 minval=1.0, maxval=5.0)        # synthetic degree vector

    nodes = jax.random.randint(k_nodes, (B,), 0, N, dtype=jnp.int32)
    pos_idx = jax.random.randint(k_pos, (B, K_pos), 0, N, dtype=jnp.int32)
    neg_idx = jax.random.randint(k_neg, (B, K_neg), 0, N, dtype=jnp.int32)
    deg_pos_idx = jax.random.randint(k_dpos, (B, K_dpos), 0, N, dtype=jnp.int32)
    deg_neg_idx = jax.random.randint(k_dneg, (B, K_dneg), 0, N, dtype=jnp.int32)

    out = position_encode_forward(P, W_d, deg_vec, nodes,
                                  pos_idx, neg_idx, deg_pos_idx, deg_neg_idx)
    l_adj, l_deg_dist, l_deg = jax.block_until_ready(out)

    r_adj, r_deg_dist, r_deg = reference_forward(P, W_d, deg_vec, nodes,
                                                 pos_idx, neg_idx,
                                                 deg_pos_idx, deg_neg_idx)

    np.testing.assert_allclose(np.asarray(l_adj), np.asarray(r_adj), rtol=1e-4, atol=1e-4)
    np.testing.assert_allclose(np.asarray(l_deg_dist), np.asarray(r_deg_dist), rtol=1e-4, atol=1e-4)
    np.testing.assert_allclose(np.asarray(l_deg), np.asarray(r_deg), rtol=1e-4, atol=1e-4)

    print("KERNEL_OK")
</pallas_src>

<mosaic_0001>
module attributes {stable_mosaic.version = 11 : i64} {
  func.func @_fused_kernel(%arg0: memref<16x8xf32, #tpu.memory_space<vmem>>, %arg1: memref<1x8xf32, #tpu.memory_space<vmem>>, %arg2: memref<16x1xf32, #tpu.memory_space<vmem>>, %arg3: memref<4x1xi32, #tpu.memory_space<vmem>>, %arg4: memref<4x16xi32, #tpu.memory_space<vmem>>, %arg5: memref<1x128xf32, #tpu.memory_space<vmem>>) attributes {dimension_semantics = [], scalar_prefetch = 0 : i64, scratch_operands = 0 : i64, tpu.core_type = #tpu.core_type<tc>} {
    %c0 = arith.constant 0 : index
    %c0_0 = arith.constant 0 : index
    %0 = vector.load %arg0[%c0, %c0_0] : memref<16x8xf32, #tpu.memory_space<vmem>>, vector<16x8xf32>
    %1 = arith.negf %0 : vector<16x8xf32>
    %2 = math.exp %1 : vector<16x8xf32>
    %cst = arith.constant 1.000000e+00 : f32
    %3 = vector.broadcast %cst : f32 to vector<16x8xf32>
    %4 = arith.addf %3, %2 : vector<16x8xf32>
    %5 = arith.divf %3, %4 : vector<16x8xf32>
    %c0_1 = arith.constant 0 : index
    %c0_2 = arith.constant 0 : index
    %6 = vector.load %arg1[%c0_1, %c0_2] : memref<1x8xf32, #tpu.memory_space<vmem>>, vector<1x8xf32>
    %7 = vector.broadcast %6 : vector<1x8xf32> to vector<16x8xf32>
    %8 = arith.mulf %5, %7 : vector<16x8xf32>
    %cst_3 = arith.constant dense<0.000000e+00> : vector<16xf32>
    %9 = vector.multi_reduction <add>, %8, %cst_3 [1] : vector<16x8xf32> to vector<16xf32>
    %10 = vector.shape_cast %9 : vector<16xf32> to vector<16x1xf32>
    %c0_4 = arith.constant 0 : index
    %c0_5 = arith.constant 0 : index
    %11 = vector.load %arg2[%c0_4, %c0_5] : memref<16x1xf32, #tpu.memory_space<vmem>>, vector<16x1xf32>
    %12 = arith.subf %10, %11 : vector<16x1xf32>
    %13 = arith.mulf %12, %12 : vector<16x1xf32>
    %cst_6 = arith.constant dense<0.000000e+00> : vector<1xf32>
    %14 = vector.multi_reduction <add>, %13, %cst_6 [0] : vector<16x1xf32> to vector<1xf32>
    %15 = vector.shape_cast %14 : vector<1xf32> to vector<1x1xf32>
    %cst_7 = arith.constant 1.600000e+01 : f32
    %16 = vector.broadcast %cst_7 : f32 to vector<1x1xf32>
    %17 = arith.divf %15, %16 : vector<1x1xf32>
    %18 = tpu.iota {dimensions = array<i32: 1>} : vector<4x16xi32>
    %c0_8 = arith.constant 0 : index
    %c0_9 = arith.constant 0 : index
    %19 = vector.load %arg3[%c0_8, %c0_9] : memref<4x1xi32, #tpu.memory_space<vmem>>, vector<4x1xi32>
    %20 = vector.broadcast %19 : vector<4x1xi32> to vector<4x16xi32>
    %21 = arith.cmpi eq, %20, %18 : vector<4x16xi32>
    %22 = arith.extui %21 : vector<4x16xi1> to vector<4x16xi32>
    %23 = arith.sitofp %22 : vector<4x16xi32> to vector<4x16xf32>
    %cst_10 = arith.constant dense<0.000000e+00> : vector<4x8xf32>
    %24 = tpu.matmul %23, %5, %cst_10 {dimension_numbers = #tpu.dot_dimension_numbers<[1], [0], [0], [1], [0, 0, 1, 1], [], []>} : vector<4x16xf32>, vector<16x8xf32>, vector<4x8xf32> -> vector<4x8xf32>
    %25 = vector.shape_cast %24 : vector<4x8xf32> to vector<4x1x8xf32>
    %26 = vector.shape_cast %5 : vector<16x8xf32> to vector<1x16x8xf32>
    %27 = vector.broadcast %25 : vector<4x1x8xf32> to vector<4x16x8xf32>
    %28 = vector.broadcast %26 : vector<1x16x8xf32> to vector<4x16x8xf32>
    %29 = arith.subf %27, %28 : vector<4x16x8xf32>
    %30 = math.absf %29 : vector<4x16x8xf32>
    %cst_11 = arith.constant dense<0.000000e+00> : vector<4x16xf32>
    %31 = vector.multi_reduction <add>, %30, %cst_11 [2] : vector<4x16x8xf32> to vector<4x16xf32>
    %c0_12 = arith.constant 0 : index
    %c0_13 = arith.constant 0 : index
    %32 = vector.load %arg4[%c0_12, %c0_13] : memref<4x16xi32, #tpu.memory_space<vmem>>, vector<4x16xi32>
    %33 = tpu.iota {dimensions = array<i32: 0>} : vector<16x1xi32>
    %34 = vector.shape_cast %33 : vector<16x1xi32> to vector<1x16x1xi32>
    %35 = vector.extract_strided_slice %32 {offsets = [0, 0], sizes = [4, 3], strides = [1, 1]} : vector<4x16xi32> to vector<4x3xi32>
    %36 = vector.shape_cast %35 : vector<4x3xi32> to vector<4x1x3xi32>
    %37 = vector.broadcast %36 : vector<4x1x3xi32> to vector<4x16x3xi32>
    %38 = vector.broadcast %34 : vector<1x16x1xi32> to vector<4x16x3xi32>
    %39 = arith.cmpi eq, %37, %38 : vector<4x16x3xi32>
    %40 = arith.extui %39 : vector<4x16x3xi1> to vector<4x16x3xi32>
    %41 = arith.sitofp %40 : vector<4x16x3xi32> to vector<4x16x3xf32>
    %cst_14 = arith.constant dense<0.000000e+00> : vector<4x16xf32>
    %42 = vector.multi_reduction <add>, %41, %cst_14 [2] : vector<4x16x3xf32> to vector<4x16xf32>
    %43 = vector.extract_strided_slice %32 {offsets = [0, 3], sizes = [4, 6], strides = [1, 1]} : vector<4x16xi32> to vector<4x6xi32>
    %44 = vector.shape_cast %43 : vector<4x6xi32> to vector<4x1x6xi32>
    %45 = vector.broadcast %44 : vector<4x1x6xi32> to vector<4x16x6xi32>
    %46 = vector.broadcast %34 : vector<1x16x1xi32> to vector<4x16x6xi32>
    %47 = arith.cmpi eq, %45, %46 : vector<4x16x6xi32>
    %48 = arith.extui %47 : vector<4x16x6xi1> to vector<4x16x6xi32>
    %49 = arith.sitofp %48 : vector<4x16x6xi32> to vector<4x16x6xf32>
    %cst_15 = arith.constant dense<0.000000e+00> : vector<4x16xf32>
    %50 = vector.multi_reduction <add>, %49, %cst_15 [2] : vector<4x16x6xf32> to vector<4x16xf32>
    %51 = vector.extract_strided_slice %32 {offsets = [0, 9], sizes = [4, 2], strides = [1, 1]} : vector<4x16xi32> to vector<4x2xi32>
    %52 = vector.shape_cast %51 : vector<4x2xi32> to vector<4x1x2xi32>
    %53 = vector.broadcast %52 : vector<4x1x2xi32> to vector<4x16x2xi32>
    %54 = vector.broadcast %34 : vector<1x16x1xi32> to vector<4x16x2xi32>
    %55 = arith.cmpi eq, %53, %54 : vector<4x16x2xi32>
    %56 = arith.extui %55 : vector<4x16x2xi1> to vector<4x16x2xi32>
    %57 = arith.sitofp %56 : vector<4x16x2xi32> to vector<4x16x2xf32>
    %cst_16 = arith.constant dense<0.000000e+00> : vector<4x16xf32>
    %58 = vector.multi_reduction <add>, %57, %cst_16 [2] : vector<4x16x2xf32> to vector<4x16xf32>
    %59 = vector.extract_strided_slice %32 {offsets = [0, 11], sizes = [4, 5], strides = [1, 1]} : vector<4x16xi32> to vector<4x5xi32>
    %60 = vector.shape_cast %59 : vector<4x5xi32> to vector<4x1x5xi32>
    %61 = vector.broadcast %60 : vector<4x1x5xi32> to vector<4x16x5xi32>
    %62 = vector.broadcast %34 : vector<1x16x1xi32> to vector<4x16x5xi32>
    %63 = arith.cmpi eq, %61, %62 : vector<4x16x5xi32>
    %64 = arith.extui %63 : vector<4x16x5xi1> to vector<4x16x5xi32>
    %65 = arith.sitofp %64 : vector<4x16x5xi32> to vector<4x16x5xf32>
    %cst_17 = arith.constant dense<0.000000e+00> : vector<4x16xf32>
    %66 = vector.multi_reduction <add>, %65, %cst_17 [2] : vector<4x16x5xf32> to vector<4x16xf32>
    %67 = arith.mulf %42, %31 : vector<4x16xf32>
    %cst_18 = arith.constant dense<0.000000e+00> : vector<4xf32>
    %68 = vector.multi_reduction <add>, %67, %cst_18 [1] : vector<4x16xf32> to vector<4xf32>
    %69 = vector.shape_cast %68 : vector<4xf32> to vector<4x1xf32>
    %cst_19 = arith.constant 3.000000e+00 : f32
    %70 = vector.broadcast %cst_19 : f32 to vector<4x1xf32>
    %71 = arith.divf %69, %70 : vector<4x1xf32>
    %cst_20 = arith.constant 0.000000e+00 : f32
    %72 = vector.broadcast %cst_20 : f32 to vector<4x16xf32>
    %73 = arith.cmpf ogt, %50, %72 : vector<4x16xf32>
    %cst_21 = arith.constant 0xFF800000 : f32
    %74 = vector.broadcast %cst_21 : f32 to vector<4x16xf32>
    %75 = arith.select %73, %31, %74 : vector<4x16xi1>, vector<4x16xf32>
    %cst_22 = arith.constant dense<0xFF800000> : vector<4xf32>
    %76 = vector.multi_reduction <maximumf>, %75, %cst_22 [1] : vector<4x16xf32> to vector<4xf32>
    %77 = vector.shape_cast %76 : vector<4xf32> to vector<4x1xf32>
    %cst_23 = arith.constant 0.000000e+00 : f32
    %78 = vector.broadcast %cst_23 : f32 to vector<4x16xf32>
    %79 = arith.cmpf ogt, %50, %78 : vector<4x16xf32>
    %80 = vector.broadcast %77 : vector<4x1xf32> to vector<4x16xf32>
    %81 = arith.subf %31, %80 : vector<4x16xf32>
    %82 = math.exp %81 : vector<4x16xf32>
    %cst_24 = arith.constant 0.000000e+00 : f32
    %83 = vector.broadcast %cst_24 : f32 to vector<4x16xf32>
    %84 = arith.select %79, %82, %83 : vector<4x16xi1>, vector<4x16xf32>
    %85 = arith.mulf %50, %84 : vector<4x16xf32>
    %cst_25 = arith.constant dense<0.000000e+00> : vector<4xf32>
    %86 = vector.multi_reduction <add>, %85, %cst_25 [1] : vector<4x16xf32> to vector<4xf32>
    %87 = vector.shape_cast %86 : vector<4xf32> to vector<4x1xf32>
    %88 = math.log %87 : vector<4x1xf32>
    %89 = arith.addf %77, %88 : vector<4x1xf32>
    %90 = arith.subf %89, %71 : vector<4x1xf32>
    %cst_26 = arith.constant dense<0.000000e+00> : vector<1xf32>
    %91 = vector.multi_reduction <add>, %90, %cst_26 [0] : vector<4x1xf32> to vector<1xf32>
    %92 = vector.shape_cast %91 : vector<1xf32> to vector<1x1xf32>
    %93 = arith.mulf %58, %31 : vector<4x16xf32>
    %cst_27 = arith.constant dense<0.000000e+00> : vector<4xf32>
    %94 = vector.multi_reduction <add>, %93, %cst_27 [1] : vector<4x16xf32> to vector<4xf32>
    %95 = vector.shape_cast %94 : vector<4xf32> to vector<4x1xf32>
    %cst_28 = arith.constant 2.000000e+00 : f32
    %96 = vector.broadcast %cst_28 : f32 to vector<4x1xf32>
    %97 = arith.divf %95, %96 : vector<4x1xf32>
    %cst_29 = arith.constant 0.000000e+00 : f32
    %98 = vector.broadcast %cst_29 : f32 to vector<4x16xf32>
    %99 = arith.cmpf ogt, %66, %98 : vector<4x16xf32>
    %cst_30 = arith.constant 0xFF800000 : f32
    %100 = vector.broadcast %cst_30 : f32 to vector<4x16xf32>
    %101 = arith.select %99, %31, %100 : vector<4x16xi1>, vector<4x16xf32>
    %cst_31 = arith.constant dense<0xFF800000> : vector<4xf32>
    %102 = vector.multi_reduction <maximumf>, %101, %cst_31 [1] : vector<4x16xf32> to vector<4xf32>
    %103 = vector.shape_cast %102 : vector<4xf32> to vector<4x1xf32>
    %cst_32 = arith.constant 0.000000e+00 : f32
    %104 = vector.broadcast %cst_32 : f32 to vector<4x16xf32>
    %105 = arith.cmpf ogt, %66, %104 : vector<4x16xf32>
    %106 = vector.broadcast %103 : vector<4x1xf32> to vector<4x16xf32>
    %107 = arith.subf %31, %106 : vector<4x16xf32>
    %108 = math.exp %107 : vector<4x16xf32>
    %cst_33 = arith.constant 0.000000e+00 : f32
    %109 = vector.broadcast %cst_33 : f32 to vector<4x16xf32>
    %110 = arith.select %105, %108, %109 : vector<4x16xi1>, vector<4x16xf32>
    %111 = arith.mulf %66, %110 : vector<4x16xf32>
    %cst_34 = arith.constant dense<0.000000e+00> : vector<4xf32>
    %112 = vector.multi_reduction <add>, %111, %cst_34 [1] : vector<4x16xf32> to vector<4xf32>
    %113 = vector.shape_cast %112 : vector<4xf32> to vector<4x1xf32>
    %114 = math.log %113 : vector<4x1xf32>
    %115 = arith.addf %103, %114 : vector<4x1xf32>
    %116 = arith.subf %115, %97 : vector<4x1xf32>
    %cst_35 = arith.constant dense<0.000000e+00> : vector<1xf32>
    %117 = vector.multi_reduction <add>, %116, %cst_35 [0] : vector<4x1xf32> to vector<1xf32>
    %118 = vector.shape_cast %117 : vector<1xf32> to vector<1x1xf32>
    %119 = tpu.iota {dimensions = array<i32: 1>} : vector<1x128xi32>
    %c0_i32 = arith.constant 0 : i32
    %120 = vector.broadcast %c0_i32 : i32 to vector<1x128xi32>
    %121 = arith.cmpi eq, %119, %120 : vector<1x128xi32>
    %122 = arith.extui %121 : vector<1x128xi1> to vector<1x128xi32>
    %123 = arith.sitofp %122 : vector<1x128xi32> to vector<1x128xf32>
    %124 = vector.broadcast %92 : vector<1x1xf32> to vector<1x128xf32>
    %125 = arith.mulf %124, %123 : vector<1x128xf32>
    %c1_i32 = arith.constant 1 : i32
    %126 = vector.broadcast %c1_i32 : i32 to vector<1x128xi32>
    %127 = arith.cmpi eq, %119, %126 : vector<1x128xi32>
    %128 = arith.extui %127 : vector<1x128xi1> to vector<1x128xi32>
    %129 = arith.sitofp %128 : vector<1x128xi32> to vector<1x128xf32>
    %130 = vector.broadcast %118 : vector<1x1xf32> to vector<1x128xf32>
    %131 = arith.mulf %130, %129 : vector<1x128xf32>
    %132 = arith.addf %125, %131 : vector<1x128xf32>
    %c2_i32 = arith.constant 2 : i32
    %133 = vector.broadcast %c2_i32 : i32 to vector<1x128xi32>
    %134 = arith.cmpi eq, %119, %133 : vector<1x128xi32>
    %135 = arith.extui %134 : vector<1x128xi1> to vector<1x128xi32>
    %136 = arith.sitofp %135 : vector<1x128xi32> to vector<1x128xf32>
    %137 = vector.broadcast %17 : vector<1x1xf32> to vector<1x128xf32>
    %138 = arith.mulf %137, %136 : vector<1x128xf32>
    %139 = arith.addf %132, %138 : vector<1x128xf32>
    %c0_36 = arith.constant 0 : index
    %c0_37 = arith.constant 0 : index
    %140 = vector.load %arg5[%c0_36, %c0_37] : memref<1x128xf32, #tpu.memory_space<vmem>>, vector<1x128xf32>
    tpu.vector_store %arg5[%c0_36, %c0_37], %139 {strides = array<i32>} : memref<1x128xf32, #tpu.memory_space<vmem>>, vector<1x128xf32>,
    return
  }
}

</mosaic_0001>

<bundles_post_ra>
// kernel: tpu_custom_call.1
= control target key start
LH: loop header
LB: loop body
LE: loop exit
PB: predicated region body
PF: predicated region fallthrough
CT: control target
= control target key end

     0   :  { %v98_v1 = vlaneseq  ;;  %v999_v3 = vmov 0   ;;  %s1542_s0 = inlined_call_operand.vmem [shape: f32[16,8], index: 0, kind: input, shape index: {}]   ;;  %s1543_s1 = inlined_call_operand.vmem [shape: f32[1,8], index: 1, kind: input, shape index: {}]   ;;  %s1544_s2 = inlined_call_operand.vmem [shape: f32[16,1], index: 2, kind: input, shape index: {}]   ;;  %s1545_s3 = inlined_call_operand.vmem [shape: s32[4,1], index: 3, kind: input, shape index: {}]   ;;  %s1546_s4 = inlined_call_operand.vmem [shape: s32[4,16], index: 4, kind: input, shape index: {}]   ;;  %s1547_s5 = inlined_call_operand.hbm [shape: f32[1,128], index: 5, kind: output, shape index: {}]  }
   0x1   :  { %v100_v0 = vld [vmem:[%s1545_s3] sm:$0xf]  ;;  %859 = vset.pattern.permute.xlu1 %v999_v3  ;;  %v22_v6 = vld [vmem:[%s1542_s0 + $0x8] sm:$0xff]  ;;  %921 = vset.pattern.permute.xlu2 %v999_v3 }
   0x2   :  { %v183_v2 = vld [vmem:[%s1546_s4] sm:$0xf]  ;;  %102 = vperm.xlu1 %859, %v100_v0   ;;  %v185_v7 = vshrl.u32 %v98_v1, 7  ;;  %920 = vset.pattern.permute.xlu0 %v999_v3  ;;  %v836_v12 = vmul.f32 -1.442695, %v22_v6 }
   0x3   :  { %v187_v4 = vrot.slane %v183_v2, 1  ;;  %v21_v5 = vld [vmem:[%s1542_s0] sm:$0xff]  ;;  %v190_v8 = vperm.slane %v183_v2, 0 }
   0x4   :  { %v835_v9 = vmul.f32 -1.442695, %v21_v5  ;;  %v1051_v11 = vadd.s32 8, %v185_v7 }
   0x5   :  { %v191_v10 = vperm.slane %v187_v4, 0  ;;  %vm194_vm0 = vcmp.eq.s32.totalorder %v190_v8, %v185_v7 }
   0x6   :  { %923 = vpow2.f32 %v835_v9 }
   0x7   :  { %10 = vsyncpa [#allocation3], 0  ;;  %vm218_vm1 = vcmask 23552   ;;  %v1000_v13 = vmov 0.0   ;;  %vm195_vm2 = vcmp.eq.s32.totalorder %v190_v8, %v1051_v11  ;;  %vm196_vm3 = vcmp.eq.s32.totalorder %v191_v10, %v185_v7  ;;  %v922_v46 = vld [vmem:[%s1543_s1] ss:$0 sm:$0xff] }
   0x8   :  { %v1054_v14 = vsel %vm194_vm0, 1.0, %v1000_v13  ;;  %v188_v16 = vrot.slane %v183_v2, 2  ;;  %v1060_v17 = vsel %vm195_vm2, 1.0, %v1000_v13  ;;  %vm197_vm4 = vcmp.eq.s32.totalorder %v191_v10, %v1051_v11  ;;  %s1001_s1 = smov 125   ;;  %s1002_s4 = smov 119  }
   0x9   :  { %v219_v15 = vsel %vm218_vm1, %v1054_v14, 0.0  ;;  %v222_v18 = vsel %vm218_vm1, %v1060_v17, 0.0  ;;  %v189_v19 = vrot.slane %v183_v2, 3  ;;  %925 = vpow2.f32 %v836_v12  ;;  %s1007_s30 = smov [#allocation2]   ;;  %s826_s9 = sshll.u32 %s1547_s5, 4  ;;  %s827_s9 = int_to_ptr.hbm [resolvable:$true] %s826_s9 }
   0xa   :  { %220 = vadd.xlane.f32.xlu2 %v219_v15  ;;  %223 = vadd.xlane.f32.xlu0 %v222_v18  ;;  %v1066_v20 = vsel %vm196_vm3, 1.0, %v1000_v13  ;;  %v1068_v22 = vperm.slane %v188_v16, 0  ;;  %v1071_v23 = vsel %vm197_vm4, 1.0, %v1000_v13  ;;  %vm67_vm14 = vcmask 64512   ;;  %s824_s6 = sshll.u32 %s1007_s30, 4  ;;  %s825_s6 = int_to_ptr.vmem [resolvable:$true] %s824_s6 }
   0xb   :  { %v193_v25 = vperm.slane %v189_v19, 0  ;;  %v225_v26 = vsel %vm218_vm1, %v1066_v20, 0.0  ;;  %v228_v28 = vsel %vm218_vm1, %v1071_v23, 0.0  ;;  %v1107_v0 = vpack.i.bf16 %v1071_v23, %v1066_v20 }
   0xc   :  { %v924_v21 = vpop.eup %923  ;;  %vm198_vm5 = vcmp.eq.s32.totalorder %v1068_v22, %v185_v7  ;;  %vm199_vm2 = vcmp.eq.s32.totalorder %v1068_v22, %v1051_v11  ;;  %v860_v2 = vpack.i.bf16 %v1060_v17, %v1054_v14  ;;  %v1117_v4 = vand.u32 127, %v98_v1  ;;  %v74_v14 = vld [vmem:[%s1544_s2] sm:$0xff]  ;;  %v75_v17 = vld [vmem:[%s1544_s2 + $0x8] sm:$0xff]  ;;  %s1003_s2 = smov 117  }
   0xd   :  { %v29_v24 = vadd.f32 1.0, %v924_v21  ;;  %vm200_vm6 = vcmp.eq.s32.totalorder %v193_v25, %v185_v7  ;;  %v843_v30 = vsel %vm198_vm5, 1.0, %v1000_v13  ;;  %vm201_vm7 = vcmp.eq.s32.totalorder %v193_v25, %v1051_v11 }
   0xe   :  { %v845_v32 = vsel %vm200_vm6, 1.0, %v1000_v13  ;;  %v231_v34 = vsel %vm218_vm1, %v843_v30, 0.0  ;;  %v846_v42 = vsel %vm201_vm7, 1.0, %v1000_v13  ;;  %v844_v61 = vsel %vm199_vm2, 1.0, %v1000_v13 }
   0xf   :  { %927 = vrcp.f32 %v29_v24  ;;  %v926_v27 = vpop.eup %925  ;;  %v40_v35 = vand.u32 2147483647, %v29_v24  ;;  %v42_v36 = vand.u32 2147483648, %v29_v24  ;;  %v237_v37 = vsel %vm218_vm1, %v845_v32, 0.0 }
  0x10   :  { %v30_v29 = vadd.f32 1.0, %v926_v27  ;;  %vm36_vm8 = vweird.f32 %v29_v24  ;;  %v240_v51 = vsel %vm218_vm1, %v846_v42, 0.0  ;;  %v234_v62 = vsel %vm218_vm1, %v844_v61, 0.0 }
  0x11   :  { %vm41_vm11 = vcmp.eq.f32.partialorder %v40_v35, 8.507059e+37  ;;  %v43_v43 = vor.u32 1.1754944e-38, %v42_v36  ;;  %v1102_v63 = vpack.i.bf16 %v844_v61, %v843_v30  ;;  %v1112_v3 = vpack.i.bf16 %v846_v42, %v845_v32 }
  0x12   :  { %226 = vadd.xlane.f32.xlu2 %v225_v26  ;;  %229 = vadd.xlane.f32.xlu0 %v228_v28  ;;  %929 = vrcp.f32 %v30_v29  ;;  %vm51_vm12 = vweird.f32 %v30_v29  ;;  %v57_v44 = vand.u32 2147483648, %v30_v29  ;;  %v55_v48 = vand.u32 2147483647, %v30_v29 }
  0x13   :  { %vm107_vm1 = vcmask 130048   ;;  %vm275_vm4 = vcmask 48128   ;;  %vm80_vm5 = vcmask 7168   ;;  %vm324_vm6 = vcmask 15360  }
  0x14   :  { %v58_v53 = vor.u32 1.1754944e-38, %v57_v44  ;;  %vm56_vm0 = vcmp.eq.f32.partialorder %v55_v48, 8.507059e+37  ;;  %vm373_vm7 = vcmask 39936  }
  0x15   :  { %v928_v31 = vpop.eup %927 }
  0x16   :  { %v32_v33 = vmul.f32 %v928_v31, %v29_v24  ;;  %vm37_vm9 = vweird.f32 %v928_v31 }
  0x17   :  { %vm38_vm10 = vmor %vm36_vm8, %vm37_vm9  ;;  %vm417_vm8 = vcmask 130112   ;;  %vm428_vm9 = vcmask 1041409  }
  0x18   :  { %v33_v38 = vsub.f32 1.0, %v32_v33  ;;  %v930_v39 = vpop.eup %929 }
  0x19   :  { %v47_v41 = vmul.f32 %v930_v39, %v30_v29  ;;  %vm52_vm13 = vweird.f32 %v930_v39 }
  0x1a   :  { %232 = vadd.xlane.f32.xlu2 %v231_v34  ;;  %v34_v40 = vmul.f32 %v928_v31, %v33_v38  ;;  %238 = vadd.xlane.f32.xlu0 %v237_v37  ;;  %vm53_vm15 = vmor %vm51_vm12, %vm52_vm13 }
  0x1b   :  { %v48_v47 = vsub.f32 1.0, %v47_v41 }
  0x1c   :  { %v35_v45 = vadd.f32 %v928_v31, %v34_v40 }
  0x1d   :  { %v49_v50 = vmul.f32 %v930_v39, %v48_v47 }
  0x1e   :  { %v39_v49 = vsel %vm38_vm10, %v928_v31, %v35_v45 }
  0x1f   :  { %v1088_v52 = vsel %vm41_vm11, %v43_v43, %v39_v49  ;;  %v50_v55 = vadd.f32 %v930_v39, %v49_v50 }
  0x20   :  { %v65_v54 = vmul.f32 %v922_v46, %v1088_v52 }
  0x21   :  { %v54_v57 = vsel %vm53_vm15, %v930_v39, %v50_v55 }
  0x22   :  { %241 = vadd.xlane.f32.xlu2 %v240_v51  ;;  %v68_v56 = vsel %vm67_vm14, %v65_v54, 0.0  ;;  %v1092_v58 = vsel %vm56_vm0, %v58_v53, %v54_v57 }
  0x23   :  { %69 = vadd.xlane.f32.xlu0 %v68_v56  ;;  %v66_v59 = vmul.f32 %v922_v46, %v1092_v58  ;;  %125 = vmatpush.msra.mxu0 %v1092_v58 }
  0x25   :  { %126 = vmatpush.msra.mxu0 %v1088_v52  ;;  %v71_v60 = vsel %vm67_vm14, %v66_v59, 0.0 }
  0x2b   :  { %72 = vadd.xlane.f32.xlu0 %v71_v60 }
  0x2c   :  { %235 = vadd.xlane.f32.xlu1 %v234_v62 }
  0x3a   :  { %871 = vrot.lane.b32.xlu2 %v1102_v63, %s1001_s1 }
  0x3f   :  { %866 = vrot.lane.b32.xlu0 %v1107_v0, %s1001_s1 }
  0x45   :  { %861 = vrot.lane.b32.xlu1 %v860_v2, %s1001_s1 }
  0x4d   :  { %876 = vrot.lane.b32.xlu1 %v1112_v3, %s1001_s1 }
  0x55   :  { %881 = vrot.lane.b32.xlu1 %v860_v2, %s1002_s4 }
  0x74   :  { %v103_v5 = vpop.permute.xlu1 %102 }
  0x75   :  { %vm104_vm3 = vcmp.eq.s32.totalorder %v103_v5, %v1117_v4 }
  0x76   :  { %v837_v6 = vsel %vm104_vm3, 1.0, %v1000_v13 }
  0x77   :  { %838 = vmatmul.msk.f32.vlgmr.msra.gmra.mxu0 %vm107_vm1, %v837_v6 }
  0x7d   :  { %v1121_v7 = vpop.xlane.xlu2 %220  ;;  %v1123_v8 = vpop.xlane.xlu0 %223 }
  0x85   :  { %v1125_v9 = vpop.xlane.xlu2 %226  ;;  %v1127_v10 = vpop.xlane.xlu0 %229 }
  0x8d   :  { %v1129_v11 = vpop.xlane.xlu2 %232  ;;  %v1131_v12 = vpop.xlane.xlu0 %238 }
  0x95   :  { %v1133_v1 = vpop.xlane.xlu2 %241 }
  0x96   :  { %v70_v15 = vpop.xlane.xlu0 %69 }
  0x97   :  { %v76_v16 = vsub.f32 %v70_v15, %v74_v14 }
  0x99   :  { %v78_v19 = vmul.f32 %v76_v16, %v76_v16 }
  0x9b   :  { %v81_v24 = vsel %vm80_vm5, %v78_v19, 0.0 }
  0x9d   :  { %v872_v18 = vpop.permute.xlu2 %871 }
  0x9e   :  { %v873_v20 = vunpack.i.l.bf16 %v872_v18  ;;  %v73_v21 = vpop.xlane.xlu0 %72  ;;  %v874_v32 = vunpack.i.h.bf16 %v872_v18 }
  0x9f   :  { %v77_v22 = vsub.f32 %v73_v21, %v75_v17  ;;  %v1144_v28 = vpop.xlane.xlu1 %235 }
  0xa0   :  { %v288_v23 = vsel %vm275_vm4, %v873_v20, 0.0  ;;  %v291_v36 = vsel %vm275_vm4, %v874_v32, 0.0 }
  0xa1   :  { %289 = vadd.xlane.f32.xlu2 %v288_v23  ;;  %v79_v25 = vmul.f32 %v77_v22, %v77_v22 }
  0xa3   :  { %v82_v26 = vsel %vm80_vm5, %v79_v25, 0.0 }
  0xa4   :  { %v1142_v27 = vadd.f32 %v82_v26, %v81_v24 }
  0xb1   :  { %v867_v29 = vpop.permute.xlu0 %866 }
  0xb2   :  { %v868_v30 = vunpack.i.l.bf16 %v867_v29  ;;  %v869_v44 = vunpack.i.h.bf16 %v867_v29 }
  0xb4   :  { %v282_v31 = vsel %vm275_vm4, %v868_v30, 0.0  ;;  %v285_v45 = vsel %vm275_vm4, %v869_v44, 0.0 }
  0xb5   :  { %283 = vadd.xlane.f32.xlu1 %v282_v31 }
  0xb7   :  { %v862_v33 = vpop.permute.xlu1 %861 }
  0xb8   :  { %v864_v34 = vunpack.i.h.bf16 %v862_v33  ;;  %v863_v35 = vunpack.i.l.bf16 %v862_v33 }
  0xba   :  { %v279_v37 = vsel %vm275_vm4, %v864_v34, 0.0  ;;  %v276_v38 = vsel %vm275_vm4, %v863_v35, 0.0 }
  0xbb   :  { %280 = vadd.xlane.f32.xlu2 %v279_v37  ;;  %277 = vadd.xlane.f32.xlu0 %v276_v38 }
  0xbd   :  { %292 = vadd.xlane.f32.xlu1 %v291_v36 }
  0xbf   :  { %v877_v39 = vpop.permute.xlu1 %876 }
  0xc0   :  { %v879_v40 = vunpack.i.h.bf16 %v877_v39  ;;  %v878_v41 = vunpack.i.l.bf16 %v877_v39 }
  0xc2   :  { %v297_v42 = vsel %vm275_vm4, %v879_v40, 0.0  ;;  %v294_v43 = vsel %vm275_vm4, %v878_v41, 0.0 }
  0xc3   :  { %298 = vadd.xlane.f32.xlu2 %v297_v42  ;;  %295 = vadd.xlane.f32.xlu0 %v294_v43 }
  0xc7   :  { %v882_v46 = vpop.permute.xlu1 %881 }
  0xc8   :  { %v883_v47 = vunpack.i.l.bf16 %v882_v46  ;;  %v884_v49 = vunpack.i.h.bf16 %v882_v46 }
  0xca   :  { %v325_v48 = vsel %vm324_vm6, %v883_v47, 0.0  ;;  %v328_v50 = vsel %vm324_vm6, %v884_v49, 0.0 }
  0xcb   :  { %286 = vadd.xlane.f32.xlu0 %v285_v45 }
  0xd6   :  { %901 = vrot.lane.b32.xlu1 %v860_v2, %s1003_s2 }
  0xdb   :  { %891 = vrot.lane.b32.xlu2 %v1102_v63, %s1002_s4 }
  0xde   :  { %916 = vrot.lane.b32.xlu1 %v1112_v3, %s1003_s2 }
  0xdf   :  { %886 = vrot.lane.b32.xlu0 %v1107_v0, %s1002_s4 }
  0xe3   :  { %906 = vrot.lane.b32.xlu2 %v1107_v0, %s1003_s2 }
  0xe7   :  { %896 = vrot.lane.b32.xlu0 %v1112_v3, %s1002_s4 }
  0xef   :  { %911 = vrot.lane.b32.xlu0 %v1102_v63, %s1003_s2 }
  0xf4   :  { %v128_v59 = vpop.f32.mrf.mxu0 }
  0xf5   :  { %v132_v62 = vrot.slane %v128_v59, 1  ;;  %v133_v14 = vrot.slane %v128_v59, 2  ;;  %v135_v23 = vperm.slane %v128_v59, 0  ;;  %v134_v25 = vrot.slane %v128_v59, 3 }
  0xf7   :  { %v136_v63 = vperm.slane %v132_v62, 0  ;;  %v137_v21 = vperm.slane %v133_v14, 0  ;;  %v143_v31 = vsub.f32 %v135_v23, %v1088_v52  ;;  %v138_v32 = vperm.slane %v134_v25, 0 }
  0xf8   :  { %v144_v47 = vsub.f32 %v135_v23, %v1092_v58 }
  0xf9   :  { %v146_v17 = vsub.f32 %v136_v63, %v1092_v58  ;;  %v148_v30 = vsub.f32 %v137_v21, %v1092_v58  ;;  %v151_v34 = vand.u32 2147483647, %v143_v31  ;;  %v150_v38 = vsub.f32 %v138_v32, %v1092_v58 }
  0xfb   :  { %v154_v22 = vand.u32 2147483647, %v146_v17  ;;  %v156_v33 = vand.u32 2147483647, %v148_v30  ;;  %v159_v39 = vsel %vm67_vm14, %v151_v34, 0.0  ;;  %v147_v17 = vsub.f32 %v137_v21, %v1088_v52 }
  0xfc   :  { %v158_v41 = vand.u32 2147483647, %v150_v38 }
  0xfd   :  { %v168_v29 = vsel %vm67_vm14, %v154_v22, 0.0  ;;  %v174_v36 = vsel %vm67_vm14, %v156_v33, 0.0  ;;  %v149_v22 = vsub.f32 %v138_v32, %v1088_v52 }
  0xfe   :  { %v180_v44 = vsel %vm67_vm14, %v158_v41, 0.0 }
  0xff   :  { %v157_v23 = vand.u32 2147483647, %v149_v22 }
 0x10c   :  { %326 = vadd.xlane.f32.xlu2 %v325_v48 }
 0x114   :  { %v1164_v51 = vpop.xlane.xlu2 %289 }
 0x115   :  { %vm451_vm10 = vcmp.gt.f32.partialorder %v1164_v51, 0.0 }
 0x119   :  { %329 = vadd.xlane.f32.xlu0 %v328_v50  ;;  %v152_v50 = vand.u32 2147483647, %v144_v47 }
 0x128   :  { %v1168_v54 = vpop.xlane.xlu1 %283 }
 0x129   :  { %vm449_vm11 = vcmp.gt.f32.partialorder %v1168_v54, 0.0 }
 0x12e   :  { %v1166_v53 = vpop.xlane.xlu2 %280  ;;  %v1170_v55 = vpop.xlane.xlu0 %277 }
 0x12f   :  { %vm448_vm13 = vcmp.gt.f32.partialorder %v1166_v53, 0.0 }
 0x130   :  { %v1174_v57 = vpop.xlane.xlu1 %292 }
 0x131   :  { %vm1549_vm0 = vcmp.gt.f32.partialorder %v1174_v57, 0.0 }
 0x136   :  { %v1172_v56 = vpop.xlane.xlu2 %298  ;;  %v1178_v61 = vpop.xlane.xlu0 %295 }
 0x137   :  { %vm1550_vm15 = vcmp.gt.f32.partialorder %v1172_v56, 0.0  ;;  %vm453_vm1 = vcmp.gt.f32.partialorder %v1178_v61, 0.0 }
 0x13e   :  { %v1176_v60 = vpop.permute.xlu2 %891  ;;  %v1180_v15 = vpop.xlane.xlu0 %286 }
 0x13f   :  { %v893_v21 = vunpack.i.l.bf16 %v1176_v60  ;;  %vm1551_vm12 = vcmp.gt.f32.partialorder %v1180_v15, 0.0 }
 0x146   :  { %v907_v0 = vpop.permute.xlu2 %906 }
 0x147   :  { %v908_v2 = vunpack.i.l.bf16 %v907_v0  ;;  %v909_v20 = vunpack.i.h.bf16 %v907_v0  ;;  %v162_v0 = vsel %vm67_vm14, %v152_v50, 0.0 }
 0x148   :  { %v902_v3 = vpop.permute.xlu1 %901 }
 0x149   :  { %v904_v5 = vunpack.i.h.bf16 %v902_v3  ;;  %v903_v6 = vunpack.i.l.bf16 %v902_v3  ;;  %v380_v16 = vsel %vm373_vm7, %v908_v2, 0.0  ;;  %v383_v24 = vsel %vm373_vm7, %v909_v20, 0.0 }
 0x14a   :  { %381 = vadd.xlane.f32.xlu0 %v380_v16  ;;  %v145_v2 = vsub.f32 %v136_v63, %v1088_v52 }
 0x14b   :  { %v374_v18 = vsel %vm373_vm7, %v903_v6, 0.0  ;;  %v377_v19 = vsel %vm373_vm7, %v904_v5, 0.0 }
 0x14c   :  { %375 = vadd.xlane.f32.xlu1 %v374_v18  ;;  %378 = vadd.xlane.f32.xlu2 %v377_v19  ;;  %v153_v6 = vand.u32 2147483647, %v145_v2  ;;  %v894_v18 = vunpack.i.h.bf16 %v1176_v60  ;;  %v155_v19 = vand.u32 2147483647, %v147_v17 }
 0x14e   :  { %v165_v16 = vsel %vm67_vm14, %v153_v6, 0.0  ;;  %v340_v63 = vsel %vm324_vm6, %v894_v18, 0.0  ;;  %v171_v20 = vsel %vm67_vm14, %v155_v19, 0.0 }
 0x150   :  { %v917_v37 = vpop.permute.xlu1 %916 }
 0x151   :  { %v887_v26 = vpop.permute.xlu0 %886  ;;  %v918_v40 = vunpack.i.l.bf16 %v917_v37  ;;  %v919_v25 = vunpack.i.h.bf16 %v917_v37 }
 0x152   :  { %169 = vadd.xlane.f32.xlu0 %v168_v29  ;;  %v889_v49 = vunpack.i.h.bf16 %v887_v26  ;;  %v888_v3 = vunpack.i.l.bf16 %v887_v26  ;;  %v337_v29 = vsel %vm324_vm6, %v893_v21, 0.0 }
 0x153   :  { %v392_v42 = vsel %vm373_vm7, %v918_v40, 0.0  ;;  %v395_v26 = vsel %vm373_vm7, %v919_v25, 0.0 }
 0x154   :  { %384 = vadd.xlane.f32.xlu1 %v383_v24  ;;  %v334_v62 = vsel %vm324_vm6, %v889_v49, 0.0  ;;  %v331_v58 = vsel %vm324_vm6, %v888_v3, 0.0  ;;  %v177_v24 = vsel %vm67_vm14, %v157_v23, 0.0  ;;  %vm447_vm14 = vcmp.gt.f32.partialorder %v1170_v55, 0.0 }
 0x159   :  { %v897_v35 = vpop.permute.xlu0 %896 }
 0x15a   :  { %175 = vadd.xlane.f32.xlu0 %v174_v36  ;;  %v898_v5 = vunpack.i.l.bf16 %v897_v35  ;;  %v899_v30 = vunpack.i.h.bf16 %v897_v35 }
 0x15c   :  { %160 = vadd.xlane.f32.xlu1 %v159_v39  ;;  %v343_v14 = vsel %vm324_vm6, %v898_v5, 0.0  ;;  %v346_v31 = vsel %vm324_vm6, %v899_v30, 0.0 }
 0x161   :  { %v912_v43 = vpop.permute.xlu0 %911 }
 0x162   :  { %v913_v45 = vunpack.i.l.bf16 %v912_v43  ;;  %181 = vadd.xlane.f32.xlu0 %v180_v44  ;;  %v914_v48 = vunpack.i.h.bf16 %v912_v43 }
 0x164   :  { %393 = vadd.xlane.f32.xlu1 %v392_v42  ;;  %v386_v46 = vsel %vm373_vm7, %v913_v45, 0.0  ;;  %v389_v59 = vsel %vm373_vm7, %v914_v48, 0.0  ;;  %v1240_v45 = vadd.s32 4294967288, %v1117_v4 }
 0x165   :  { %387 = vadd.xlane.f32.xlu2 %v386_v46 }
 0x16a   :  { %390 = vadd.xlane.f32.xlu0 %v389_v59 }
 0x16c   :  { %335 = vadd.xlane.f32.xlu1 %v334_v62 }
 0x16d   :  { %163 = vadd.xlane.f32.xlu2 %v162_v0 }
 0x172   :  { %332 = vadd.xlane.f32.xlu0 %v331_v58 }
 0x174   :  { %344 = vadd.xlane.f32.xlu1 %v343_v14 }
 0x175   :  { %166 = vadd.xlane.f32.xlu2 %v165_v16 }
 0x17a   :  { %341 = vadd.xlane.f32.xlu0 %v340_v63 }
 0x17d   :  { %172 = vadd.xlane.f32.xlu2 %v171_v20 }
 0x17f   :  { %v327_v36 = vpop.xlane.xlu2 %326 }
 0x185   :  { %178 = vadd.xlane.f32.xlu2 %v177_v24 }
 0x18c   :  { %v330_v33 = vpop.xlane.xlu0 %329 }
 0x18d   :  { %396 = vadd.xlane.f32.xlu2 %v395_v26 }
 0x195   :  { %338 = vadd.xlane.f32.xlu2 %v337_v29 }
 0x19d   :  { %347 = vadd.xlane.f32.xlu2 %v346_v31 }
 0x1bd   :  { %v1214_v52 = vpop.xlane.xlu0 %381 }
 0x1be   :  { %vm647_vm3 = vcmp.gt.f32.partialorder %v1214_v52, 0.0 }
 0x1bf   :  { %v1216_v32 = vpop.xlane.xlu1 %375  ;;  %v1224_v60 = vpop.xlane.xlu2 %378 }
 0x1c0   :  { %vm645_vm4 = vcmp.gt.f32.partialorder %v1216_v32, 0.0  ;;  %vm646_vm5 = vcmp.gt.f32.partialorder %v1224_v60, 0.0 }
 0x1c5   :  { %v1218_v34 = vpop.xlane.xlu0 %169 }
 0x1c6   :  { %v401_v58 = vmul.f32 %v1127_v10, %v1218_v34  ;;  %v458_v14 = vsel %vm1551_vm12, %v1218_v34, -inf }
 0x1c7   :  { %v1220_v37 = vpop.xlane.xlu1 %384  ;;  %v475_v22 = vperm.slane %v458_v14, %v1240_v45 }
 0x1c8   :  { %vm1548_vm2 = vcmp.gt.f32.partialorder %v1220_v37, 0.0 }
 0x1c9   :  { %v1292_v23 = vsel %vm1548_vm2, %v1218_v34, -inf  ;;  %vm430_vm2 = vcmask 1042434  }
 0x1cd   :  { %v1222_v38 = vpop.xlane.xlu0 %175 }
 0x1ce   :  { %v403_v10 = vmul.f32 %v1144_v28, %v1222_v38  ;;  %v460_v19 = vsel %vm1549_vm0, %v1222_v38, -inf  ;;  %vm432_vm0 = vcmask 1043459  }
 0x1cf   :  { %v1226_v39 = vpop.xlane.xlu1 %160 }
 0x1d0   :  { %v602_v43 = vmul.f32 %v327_v36, %v1226_v39  ;;  %v455_v17 = vsel %vm447_vm14, %v1226_v39, -inf  ;;  %v398_v63 = vmul.f32 %v1121_v7, %v1226_v39 }
 0x1d1   :  { %v471_v21 = vperm.slane %v455_v17, %v1117_v4 }
 0x1d2   :  { %v618_v47 = vperm.slane %v602_v43, %v1117_v4  ;;  %v414_v36 = vperm.slane %v398_v63, %v1117_v4 }
 0x1d5   :  { %v1228_v35 = vpop.xlane.xlu0 %181 }
 0x1d6   :  { %v462_v29 = vsel %vm1550_vm15, %v1228_v35, -inf  ;;  %v405_v31 = vmul.f32 %v1133_v1, %v1228_v35  ;;  %vm435_vm15 = vcmask 125952  }
 0x1d7   :  { %v1232_v41 = vpop.xlane.xlu1 %393  ;;  %v481_v1 = vperm.slane %v462_v29, %v1240_v45 }
 0x1d8   :  { %v1230_v40 = vpop.xlane.xlu2 %387  ;;  %vm651_vm7 = vcmp.gt.f32.partialorder %v1232_v41, 0.0 }
 0x1d9   :  { %vm1552_vm12 = vcmp.gt.f32.partialorder %v1230_v40, 0.0 }
 0x1dd   :  { %v1234_v42 = vpop.xlane.xlu0 %390 }
 0x1de   :  { %vm650_vm6 = vcmp.gt.f32.partialorder %v1234_v42, 0.0 }
 0x1df   :  { %v336_v49 = vpop.xlane.xlu1 %335 }
 0x1e0   :  { %v1237_v44 = vpop.xlane.xlu2 %163  ;;  %v605_v59 = vmul.f32 %v336_v49, %v1218_v34  ;;  %v658_v49 = vsel %vm650_vm6, %v1222_v38, -inf }
 0x1e1   :  { %v603_v46 = vmul.f32 %v330_v33, %v1237_v44  ;;  %v399_v25 = vmul.f32 %v1123_v8, %v1237_v44  ;;  %v456_v26 = vsel %vm448_vm13, %v1237_v44, -inf  ;;  %v423_v33 = vperm.slane %v403_v10, %v1240_v45 }
 0x1e2   :  { %v622_v3 = vperm.slane %v605_v59, %v1240_v45 }
 0x1e3   :  { %v619_v48 = vperm.slane %v603_v46, %v1240_v45  ;;  %v472_v46 = vperm.slane %v456_v26, %v1240_v45 }
 0x1e5   :  { %v620_v50 = vsel %vm417_vm8, %v619_v48, %v618_v47  ;;  %v333_v62 = vpop.xlane.xlu0 %332  ;;  %v416_v48 = vperm.slane %v399_v25, %v1240_v45  ;;  %v473_v14 = vsel %vm417_vm8, %v472_v46, %v471_v21 }
 0x1e7   :  { %v418_v63 = vsel %vm417_vm8, %v416_v48, %v414_v36 }
 0x1e8   :  { %v1247_v0 = vpop.xlane.xlu2 %166 }
 0x1e9   :  { %v604_v2 = vmul.f32 %v333_v62, %v1247_v0  ;;  %v400_v20 = vmul.f32 %v1125_v9, %v1247_v0  ;;  %v457_v28 = vsel %vm449_vm11, %v1247_v0, -inf  ;;  %v420_v9 = vperm.slane %v401_v58, %v1240_v45 }
 0x1ea   :  { %v474_v30 = vperm.slane %v457_v28, %v1117_v4  ;;  %v426_v62 = vperm.slane %v405_v31, %v1240_v45  ;;  %v655_v58 = vsel %vm647_vm3, %v1247_v0, -inf  ;;  %v654_v28 = vsel %vm646_vm5, %v1237_v44, -inf }
 0x1eb   :  { %v621_v5 = vperm.slane %v604_v2, %v1117_v4  ;;  %v419_v43 = vperm.slane %v400_v20, %v1117_v4  ;;  %v672_v21 = vperm.slane %v655_v58, %v1117_v4  ;;  %v670_v36 = vperm.slane %v654_v28, %v1240_v45 }
 0x1ec   :  { %v476_v59 = vsel %vm417_vm8, %v475_v22, %v474_v30 }
 0x1ed   :  { %v623_v6 = vsel %vm417_vm8, %v622_v3, %v621_v5 }
 0x1ee   :  { %v1263_v16 = vsel %vm428_vm9, %v623_v6, %v620_v50  ;;  %v421_v6 = vsel %vm417_vm8, %v420_v9, %v419_v43  ;;  %v676_v43 = vperm.slane %v658_v49, %v1240_v45 }
 0x1f0   :  { %v1275_v18 = vpop.xlane.xlu2 %172 }
 0x1f1   :  { %v402_v24 = vmul.f32 %v1129_v11, %v1275_v18  ;;  %v459_v7 = vsel %vm451_vm10, %v1275_v18, -inf  ;;  %v478_v11 = vperm.slane %v460_v19, %v1240_v45  ;;  %v483_v19 = vsel %vm428_vm9, %v476_v59, %v473_v14 }
 0x1f2   :  { %v477_v8 = vperm.slane %v459_v7, %v1117_v4  ;;  %v429_v7 = vsel %vm428_vm9, %v421_v6, %v418_v63 }
 0x1f3   :  { %v422_v47 = vperm.slane %v402_v24, %v1117_v4 }
 0x1f4   :  { %v479_v3 = vsel %vm417_vm8, %v478_v11, %v477_v8  ;;  %v653_v11 = vsel %vm645_vm4, %v1226_v39, -inf }
 0x1f5   :  { %v424_v17 = vsel %vm417_vm8, %v423_v33, %v422_v47  ;;  %v484_v24 = vsel %vm430_vm2, %v479_v3, %v483_v19  ;;  %v673_v33 = vperm.slane %v1292_v23, %v1240_v45  ;;  %v342_v3 = vpop.xlane.xlu0 %341 }
 0x1f6   :  { %v431_v26 = vsel %vm430_vm2, %v424_v17, %v429_v7 }
 0x1f7   :  { %v674_v23 = vsel %vm417_vm8, %v673_v33, %v672_v21 }
 0x1f8   :  { %v1329_v50 = vpop.xlane.xlu2 %178 }
 0x1f9   :  { %v461_v2 = vsel %vm453_vm1, %v1329_v50, -inf  ;;  %v404_v5 = vmul.f32 %v1131_v12, %v1329_v50  ;;  %v657_v12 = vsel %vm1552_vm12, %v1275_v18, -inf  ;;  %v659_v47 = vsel %vm651_vm7, %v1329_v50, -inf }
 0x1fa   :  { %v480_v10 = vperm.slane %v461_v2, %v1117_v4  ;;  %v675_v31 = vperm.slane %v657_v12, %v1117_v4  ;;  %v678_v2 = vperm.slane %v659_v47, %v1117_v4 }
 0x1fb   :  { %v425_v20 = vperm.slane %v404_v5, %v1117_v4 }
 0x1fc   :  { %v482_v22 = vsel %vm417_vm8, %v481_v1, %v480_v10  ;;  %v669_v1 = vperm.slane %v653_v11, %v1117_v4  ;;  %v677_v59 = vsel %vm417_vm8, %v676_v43, %v675_v31  ;;  %v607_v10 = vmul.f32 %v342_v3, %v1222_v38 }
 0x1fd   :  { %v485_v9 = vsel %vm432_vm0, %v482_v22, %v484_v24  ;;  %v427_v25 = vsel %vm417_vm8, %v426_v62, %v425_v20  ;;  %v1402_v24 = vpop.xlane.xlu1 %344 }
 0x1fe   :  { %v487_v29 = vsel %vm435_vm15, %v485_v9, -inf  ;;  %v433_v30 = vsel %vm432_vm0, %v427_v25, %v431_v26  ;;  %v671_v62 = vsel %vm417_vm8, %v670_v36, %v669_v1  ;;  %v625_v20 = vperm.slane %v607_v10, %v1240_v45 }
 0x1ff   :  { %488 = vmax.xlane.f32.xlu1 %v487_v29  ;;  %v436_v8 = vsel %vm435_vm15, %v433_v30, 0.0  ;;  %v681_v5 = vsel %vm428_vm9, %v674_v23, %v671_v62 }
 0x200   :  { %v1373_v46 = vpop.xlane.xlu2 %396  ;;  %437 = vadd.xlane.f32.xlu0 %v436_v8  ;;  %v682_v58 = vsel %vm430_vm2, %v677_v59, %v681_v5 }
 0x201   :  { %vm652_vm12 = vcmp.gt.f32.partialorder %v1373_v46, 0.0 }
 0x202   :  { %v660_v48 = vsel %vm652_vm12, %v1228_v35, -inf }
 0x203   :  { %v679_v49 = vperm.slane %v660_v48, %v1240_v45 }
 0x205   :  { %v680_v6 = vsel %vm417_vm8, %v679_v49, %v678_v2 }
 0x206   :  { %v683_v14 = vsel %vm432_vm0, %v680_v6, %v682_v58 }
 0x207   :  { %v685_v17 = vsel %vm435_vm15, %v683_v14, -inf }
 0x208   :  { %v339_v19 = vpop.xlane.xlu2 %338  ;;  %686 = vmax.xlane.f32.xlu2 %v685_v17 }
 0x209   :  { %v606_v63 = vmul.f32 %v339_v19, %v1275_v18 }
 0x20b   :  { %v624_v12 = vperm.slane %v606_v63, %v1117_v4 }
 0x20d   :  { %v626_v28 = vsel %vm417_vm8, %v625_v20, %v624_v12 }
 0x20e   :  { %v1400_v22 = vsel %vm430_vm2, %v626_v28, %v1263_v16 }
 0x210   :  { %v1406_v9 = vpop.xlane.xlu2 %347 }
 0x272   :  { %v1404_v7 = vpop.xlane.xlu1 %488 }
 0x273   :  { %v491_v25 = vperm.slane %v1404_v7, 0  ;;  %v492_v26 = vperm.slane %v1404_v7, 1  ;;  %v493_v21 = vperm.slane %v1404_v7, 2  ;;  %v494_v11 = vperm.slane %v1404_v7, 3 }
 0x275   :  { %v499_v29 = vsub.f32 %v1226_v39, %v491_v25  ;;  %v500_v30 = vsub.f32 %v1237_v44, %v491_v25  ;;  %v501_v16 = vsub.f32 %v1247_v0, %v492_v26  ;;  %v502_v31 = vsub.f32 %v1218_v34, %v492_v26 }
 0x276   :  { %v503_v43 = vsub.f32 %v1275_v18, %v493_v21  ;;  %v506_v47 = vsub.f32 %v1228_v35, %v494_v11  ;;  %v504_v2 = vsub.f32 %v1222_v38, %v493_v21  ;;  %v505_v5 = vsub.f32 %v1329_v50, %v494_v11 }
 0x277   :  { %v507_v33 = vmul.f32 1.442695, %v499_v29  ;;  %v509_v8 = vmul.f32 1.442695, %v500_v30  ;;  %v511_v36 = vmul.f32 1.442695, %v501_v16 }
 0x278   :  { %v513_v1 = vmul.f32 1.442695, %v502_v31  ;;  %v515_v48 = vmul.f32 1.442695, %v503_v43  ;;  %v521_v59 = vmul.f32 1.442695, %v506_v47 }
 0x279   :  { %931 = vpow2.f32 %v507_v33  ;;  %v517_v14 = vmul.f32 1.442695, %v504_v2  ;;  %v519_v63 = vmul.f32 1.442695, %v505_v5 }
 0x27a   :  { %933 = vpow2.f32 %v509_v8 }
 0x27b   :  { %935 = vpow2.f32 %v511_v36  ;;  %v1418_v23 = vpop.xlane.xlu2 %686 }
 0x27c   :  { %v690_v49 = vperm.slane %v1418_v23, 1  ;;  %937 = vpow2.f32 %v513_v1  ;;  %v689_v10 = vperm.slane %v1418_v23, 0 }
 0x27d   :  { %939 = vpow2.f32 %v515_v48 }
 0x27e   :  { %941 = vpow2.f32 %v521_v59  ;;  %v699_v58 = vsub.f32 %v1247_v0, %v690_v49  ;;  %v691_v0 = vperm.slane %v1418_v23, 2  ;;  %v697_v30 = vsub.f32 %v1226_v39, %v689_v10 }
 0x27f   :  { %v932_v62 = vpop.eup %931  ;;  %943 = vpow2.f32 %v517_v14  ;;  %v700_v48 = vsub.f32 %v1218_v34, %v690_v49 }
 0x280   :  { %v934_v3 = vpop.eup %933  ;;  %v523_v28 = vsel %vm447_vm14, %v932_v62, 0.0  ;;  %v709_v26 = vmul.f32 1.442695, %v699_v58  ;;  %945 = vpow2.f32 %v519_v63  ;;  %v705_v33 = vmul.f32 1.442695, %v697_v30 }
 0x281   :  { %v936_v6 = vpop.eup %935  ;;  %v524_v19 = vsel %vm448_vm13, %v934_v3, 0.0  ;;  %v531_v21 = vmul.f32 %v523_v28, %v1170_v55  ;;  %vm1554_vm13 = vcmp.gt.f32.partialorder %v1172_v56, 0.0  ;;  %v701_v59 = vsub.f32 %v1275_v18, %v691_v0 }
 0x282   :  { %v525_v17 = vsel %vm449_vm11, %v936_v6, 0.0  ;;  %v532_v12 = vmul.f32 %v524_v19, %v1166_v53  ;;  %v938_v25 = vpop.eup %937  ;;  %v698_v53 = vsub.f32 %v1237_v44, %v689_v10  ;;  %947 = vpow2.f32 %v709_v26 }
 0x283   :  { %v533_v20 = vmul.f32 %v525_v17, %v1168_v54  ;;  %v940_v11 = vpop.eup %939  ;;  %548 = vperm.xlu0 %920, %v531_v21   ;;  %v702_v54 = vsub.f32 %v1222_v38, %v691_v0  ;;  %vm1553_vm11 = vcmp.gt.f32.partialorder %v1180_v15, 0.0  ;;  %949 = vpow2.f32 %v705_v33  ;;  %v1492_v33 = vpop.xlane.xlu0 %437 }
 0x284   :  { %551 = vperm.xlu1 %859, %v532_v12   ;;  %v942_v29 = vpop.eup %941  ;;  %v527_v16 = vsel %vm451_vm10, %v940_v11, 0.0  ;;  %v526_v55 = vsel %vm1553_vm11, %v938_v25, 0.0  ;;  %v707_v8 = vmul.f32 1.442695, %v698_v53  ;;  %vm1555_vm10 = vcmp.gt.f32.partialorder %v1174_v57, 0.0 }
 0x285   :  { %554 = vperm.xlu2 %921, %v533_v20   ;;  %v530_v31 = vsel %vm1554_vm13, %v942_v29, 0.0  ;;  %v535_v39 = vmul.f32 %v527_v16, %v1164_v51  ;;  %v534_v36 = vmul.f32 %v526_v55, %v1180_v15  ;;  %v944_v43 = vpop.eup %943  ;;  %v715_v44 = vmul.f32 1.442695, %v702_v54 }
 0x286   :  { %v538_v38 = vmul.f32 %v530_v31, %v1172_v56  ;;  %v946_v47 = vpop.eup %945  ;;  %951 = vpow2.f32 %v707_v8  ;;  %v528_v15 = vsel %vm1555_vm10, %v944_v43, 0.0  ;;  %v692_v62 = vperm.slane %v1418_v23, 3 }
 0x287   :  { %953 = vpow2.f32 %v715_v44  ;;  %v529_v51 = vsel %vm453_vm1, %v946_v47, 0.0  ;;  %v711_v2 = vmul.f32 1.442695, %v700_v48  ;;  %v713_v3 = vmul.f32 1.442695, %v701_v59 }
 0x288   :  { %v948_v1 = vpop.eup %947  ;;  %v537_v34 = vmul.f32 %v529_v51, %v1178_v61  ;;  %v536_v49 = vmul.f32 %v528_v15, %v1174_v57  ;;  %v703_v14 = vsub.f32 %v1329_v50, %v692_v62  ;;  %v704_v10 = vsub.f32 %v1228_v35, %v692_v62 }
 0x289   :  { %v723_v56 = vsel %vm647_vm3, %v948_v1, 0.0  ;;  %v950_v18 = vpop.eup %949  ;;  %955 = vpow2.f32 %v711_v2  ;;  %vm1556_vm14 = vcmp.gt.f32.partialorder %v1230_v40, 0.0  ;;  %vm1557_vm1 = vcmp.gt.f32.partialorder %v1220_v37, 0.0 }
 0x28a   :  { %v731_v5 = vmul.f32 %v723_v56, %v1214_v52  ;;  %957 = vpow2.f32 %v713_v3  ;;  %v721_v57 = vsel %vm645_vm4, %v950_v18, 0.0  ;;  %v717_v52 = vmul.f32 1.442695, %v703_v14 }
 0x28b   :  { %569 = vperm.xlu0 %920, %v538_v38   ;;  %v719_v19 = vmul.f32 1.442695, %v704_v10  ;;  %v729_v20 = vmul.f32 %v721_v57, %v1216_v32  ;;  %v1004_v43 = vmov 16.0   ;;  %v84_v59 = vrot.slane %v1142_v27, 4 }
 0x28c   :  { %557 = vperm.xlu1 %859, %v534_v36   ;;  %v952_v6 = vpop.eup %951  ;;  %959 = vpow2.f32 %v717_v52  ;;  %vm808_vm3 = vcmp.eq.s32.totalorder %v1117_v4, 2 }
 0x28d   :  { %560 = vperm.xlu2 %921, %v535_v39   ;;  %v954_v58 = vpop.eup %953  ;;  %v722_v17 = vsel %vm646_vm5, %v952_v6, 0.0  ;;  %961 = vpow2.f32 %v719_v19  ;;  %v85_v6 = vadd.f32 %v84_v59, %v1142_v27 }
 0x28e   :  { %v726_v61 = vsel %vm650_vm6, %v954_v58, 0.0  ;;  %v730_v63 = vmul.f32 %v722_v17, %v1224_v60  ;;  %963 = vrcp.f32 %v1004_v43  ;;  %v1006_v43 = vmov 2.0  }
 0x28f   :  { %v956_v12 = vpop.eup %955  ;;  %v734_v28 = vmul.f32 %v726_v61, %v1234_v42  ;;  %v86_v57 = vrot.slane %v85_v6, 2 }
 0x290   :  { %v958_v25 = vpop.eup %957  ;;  %v724_v26 = vsel %vm1557_vm1, %v956_v12, 0.0 }
 0x291   :  { %v725_v0 = vsel %vm1556_vm14, %v958_v25, 0.0  ;;  %v732_v60 = vmul.f32 %v724_v26, %v1220_v37  ;;  %v608_v37 = vmul.f32 %v1402_v24, %v1329_v50 }
 0x292   :  { %v733_v21 = vmul.f32 %v725_v0, %v1230_v40  ;;  %v960_v32 = vpop.eup %959  ;;  %v609_v40 = vmul.f32 %v1406_v9, %v1228_v35 }
 0x293   :  { %752 = vperm.xlu0 %920, %v731_v5   ;;  %v962_v11 = vpop.eup %961  ;;  %v727_v29 = vsel %vm651_vm7, %v960_v32, 0.0  ;;  %v627_v16 = vperm.slane %v608_v37, %v1117_v4 }
 0x294   :  { %563 = vperm.xlu1 %859, %v536_v49   ;;  %v728_v42 = vsel %vm652_vm12, %v962_v11, 0.0  ;;  %v735_v53 = vmul.f32 %v727_v29, %v1232_v41  ;;  %v628_v54 = vperm.slane %v609_v40, %v1240_v45  ;;  %v964_v3 = vpop.eup %963 }
 0x295   :  { %566 = vperm.xlu2 %921, %v537_v34   ;;  %v736_v30 = vmul.f32 %v728_v42, %v1373_v46  ;;  %v91_v10 = vmul.f32 16.0, %v964_v3  ;;  %vm95_vm12 = vweird.f32 %v964_v3 }
 0x296   :  { %v629_v55 = vsel %vm417_vm8, %v628_v54, %v627_v16 }
 0x297   :  { %v632_v31 = vsel %vm432_vm0, %v629_v55, %v1400_v22  ;;  %v92_v52 = vsub.f32 1.0, %v91_v10 }
 0x298   :  { %v634_v46 = vsel %vm435_vm15, %v632_v31, 0.0 }
 0x29b   :  { %761 = vperm.xlu0 %920, %v734_v28  }
 0x29c   :  { %746 = vperm.xlu1 %859, %v729_v20   ;;  %v93_v20 = vmul.f32 %v964_v3, %v92_v52 }
 0x29d   :  { %749 = vperm.xlu2 %921, %v730_v63   ;;  %v87_v63 = vadd.f32 %v86_v57, %v85_v6 }
 0x29e   :  { %v94_v0 = vadd.f32 %v964_v3, %v93_v20 }
 0x29f   :  { %v88_v25 = vrot.slane %v87_v63, 1 }
 0x2a1   :  { %v89_v11 = vadd.f32 %v88_v25, %v87_v63 }
 0x2a4   :  { %755 = vperm.xlu1 %859, %v732_v60  }
 0x2a5   :  { %758 = vperm.xlu2 %921, %v733_v21  }
 0x2ac   :  { %764 = vperm.xlu1 %859, %v735_v53  }
 0x2ad   :  { %767 = vperm.xlu2 %921, %v736_v30   ;;  %v96_v30 = vsel %vm95_vm12, %v964_v3, %v94_v0 }
 0x2ae   :  { %v97_v31 = vmul.f32 %v96_v30, %v89_v11 }
 0x2d6   :  { %635 = vadd.xlane.f32.xlu2 %v634_v46 }
 0x2df   :  { %v555_v41 = vpop.permute.xlu2 %554 }
 0x2e0   :  { %v574_v44 = vperm.slane %v555_v41, %v1117_v4 }
 0x2e7   :  { %v561_v8 = vpop.permute.xlu2 %560 }
 0x2e8   :  { %v577_v51 = vperm.slane %v561_v8, %v1117_v4 }
 0x2ef   :  { %v567_v39 = vpop.permute.xlu2 %566 }
 0x2f0   :  { %v580_v56 = vperm.slane %v567_v39, %v1117_v4  ;;  %v1005_v39 = vmov 3.0  }
 0x2f1   :  { %965 = vrcp.f32 %v1005_v39 }
 0x2f5   :  { %v549_v9 = vpop.permute.xlu0 %548 }
 0x2f6   :  { %v552_v35 = vpop.permute.xlu1 %551  ;;  %v571_v38 = vperm.slane %v549_v9, %v1117_v4 }
 0x2f7   :  { %v572_v22 = vperm.slane %v552_v35, %v1240_v45  ;;  %v750_v62 = vpop.permute.xlu2 %749 }
 0x2f8   :  { %v770_v60 = vperm.slane %v750_v62, %v1240_v45 }
 0x2f9   :  { %v573_v2 = vsel %vm417_vm8, %v572_v22, %v571_v38 }
 0x2fd   :  { %v570_v36 = vpop.permute.xlu0 %569 }
 0x2fe   :  { %v558_v50 = vpop.permute.xlu1 %557  ;;  %v581_v1 = vperm.slane %v570_v36, %v1240_v45 }
 0x2ff   :  { %v575_v24 = vperm.slane %v558_v50, %v1240_v45  ;;  %v759_v19 = vpop.permute.xlu2 %758  ;;  %v966_v50 = vpop.eup %965 }
 0x300   :  { %v582_v18 = vsel %vm417_vm8, %v581_v1, %v580_v56  ;;  %v775_v40 = vperm.slane %v759_v19, %v1117_v4 }
 0x301   :  { %v576_v47 = vsel %vm417_vm8, %v575_v24, %v574_v44  ;;  %v440_v24 = vmul.f32 3.0, %v966_v50 }
 0x302   :  { %v583_v49 = vsel %vm428_vm9, %v576_v47, %v573_v2 }
 0x303   :  { %v441_v36 = vsub.f32 1.0, %v440_v24 }
 0x305   :  { %v753_v61 = vpop.permute.xlu0 %752  ;;  %v442_v44 = vmul.f32 %v966_v50, %v441_v36 }
 0x306   :  { %v564_v48 = vpop.permute.xlu1 %563  ;;  %v772_v27 = vperm.slane %v753_v61, %v1117_v4 }
 0x307   :  { %v578_v15 = vperm.slane %v564_v48, %v1240_v45  ;;  %v768_v42 = vpop.permute.xlu2 %767  ;;  %v443_v38 = vadd.f32 %v966_v50, %v442_v44 }
 0x308   :  { %v779_v16 = vperm.slane %v768_v42, %v1240_v45 }
 0x309   :  { %v579_v34 = vsel %vm417_vm8, %v578_v15, %v577_v51 }
 0x30a   :  { %v584_v5 = vsel %vm430_vm2, %v579_v34, %v583_v49 }
 0x30b   :  { %v585_v58 = vsel %vm432_vm0, %v582_v18, %v584_v5 }
 0x30c   :  { %v587_v14 = vsel %vm435_vm15, %v585_v58, 0.0 }
 0x30d   :  { %588 = vadd.xlane.f32.xlu0 %v587_v14  ;;  %v762_v21 = vpop.permute.xlu0 %761 }
 0x30e   :  { %v747_v17 = vpop.permute.xlu1 %746  ;;  %v776_v29 = vperm.slane %v762_v21, %v1240_v45  ;;  %v849_v21 = vsel %vm808_vm3, 1.0, %v1000_v13 }
 0x30f   :  { %v769_v26 = vperm.slane %v747_v17, %v1117_v4 }
 0x310   :  { %v777_v46 = vsel %vm417_vm8, %v776_v29, %v775_v40 }
 0x311   :  { %v771_v53 = vsel %vm417_vm8, %v770_v60, %v769_v26 }
 0x316   :  { %v756_v12 = vpop.permute.xlu1 %755 }
 0x317   :  { %v773_v28 = vperm.slane %v756_v12, %v1240_v45 }
 0x319   :  { %v774_v32 = vsel %vm417_vm8, %v773_v28, %v772_v27 }
 0x31a   :  { %v781_v54 = vsel %vm428_vm9, %v774_v32, %v771_v53  ;;  %vm594_vm9 = vcmask 1043456  }
 0x31b   :  { %v782_v8 = vsel %vm430_vm2, %v777_v46, %v781_v54  ;;  %vm803_vm2 = vcmp.eq.s32.totalorder %v1117_v4, 1 }
 0x31c   :  { %v848_v27 = vsel %vm803_vm2, 1.0, %v1000_v13 }
 0x31e   :  { %v765_v37 = vpop.permute.xlu1 %764 }
 0x31f   :  { %v778_v55 = vperm.slane %v765_v37, %v1117_v4 }
 0x321   :  { %813 = vperm.xlu0 %920, %v97_v31   ;;  %v780_v41 = vsel %vm417_vm8, %v779_v16, %v778_v55  ;;  %vm444_vm8 = vweird.f32 %v966_v50 }
 0x322   :  { %v783_v35 = vsel %vm432_vm0, %v780_v41, %v782_v8  ;;  %v445_v48 = vsel %vm444_vm8, %v966_v50, %v443_v38  ;;  %vm799_vm0 = vcmp.eq.s32.totalorder %v1117_v4, 0 }
 0x323   :  { %v785_v9 = vsel %vm435_vm15, %v783_v35, 0.0  ;;  %v446_v15 = vmul.f32 %v445_v48, %v1492_v33 }
 0x324   :  { %786 = vadd.xlane.f32.xlu1 %v785_v9 }
 0x349   :  { %v636_v58 = vpop.xlane.xlu2 %635 }
 0x380   :  { %v589_v45 = vpop.xlane.xlu0 %588 }
 0x381   :  { %967 = vlog2.f32 %v589_v45 }
 0x382   :  { %969 = vrcp.f32 %v1006_v43 }
 0x387   :  { %v968_v22 = vpop.eup %967 }
 0x388   :  { %v970_v47 = vpop.eup %969  ;;  %v591_v1 = vmul.f32 0.6931472, %v968_v22 }
 0x389   :  { %v638_v59 = vmul.f32 2.0, %v970_v47  ;;  %vm642_vm15 = vweird.f32 %v970_v47 }
 0x38a   :  { %v592_v51 = vadd.f32 %v591_v1, %v1404_v7 }
 0x38b   :  { %v639_v56 = vsub.f32 1.0, %v638_v59 }
 0x38c   :  { %v593_v62 = vsub.f32 %v592_v51, %v446_v15 }
 0x38d   :  { %v640_v2 = vmul.f32 %v970_v47, %v639_v56 }
 0x38e   :  { %v595_v3 = vsel %vm594_vm9, %v593_v62, 0.0 }
 0x38f   :  { %v641_v49 = vadd.f32 %v970_v47, %v640_v2  ;;  %v596_v18 = vrot.slane %v595_v3, 4 }
 0x391   :  { %v643_v6 = vsel %vm642_vm15, %v970_v47, %v641_v49  ;;  %v597_v14 = vadd.f32 %v596_v18, %v595_v3 }
 0x392   :  { %v644_v17 = vmul.f32 %v643_v6, %v636_v58 }
 0x393   :  { %v598_v33 = vrot.slane %v597_v14, 2  ;;  %v814_v60 = vpop.permute.xlu0 %813 }
 0x394   :  { %v816_v42 = vmul.f32 %v849_v21, %v814_v60 }
 0x395   :  { %v599_v52 = vadd.f32 %v598_v33, %v597_v14 }
 0x397   :  { %v787_v34 = vpop.xlane.xlu1 %786  ;;  %v600_v12 = vrot.slane %v599_v52, 1 }
 0x398   :  { %971 = vlog2.f32 %v787_v34 }
 0x399   :  { %v601_v25 = vadd.f32 %v600_v12, %v599_v52 }
 0x39e   :  { %v972_v5 = vpop.eup %971 }
 0x39f   :  { %v789_v10 = vmul.f32 0.6931472, %v972_v5 }
 0x3a1   :  { %v790_v7 = vadd.f32 %v789_v10, %v1418_v23  ;;  %v847_v23 = vsel %vm799_vm0, 1.0, %v1000_v13 }
 0x3a2   :  { %v802_v32 = vmul.f32 %v847_v23, %v601_v25 }
 0x3a3   :  { %v791_v57 = vsub.f32 %v790_v7, %v644_v17 }
 0x3a5   :  { %v792_v61 = vsel %vm594_vm9, %v791_v57, 0.0 }
 0x3a6   :  { %v793_v19 = vrot.slane %v792_v61, 4 }
 0x3a8   :  { %v794_v63 = vadd.f32 %v793_v19, %v792_v61 }
 0x3aa   :  { %v795_v20 = vrot.slane %v794_v63, 2 }
 0x3ac   :  { %v796_v28 = vadd.f32 %v795_v20, %v794_v63 }
 0x3ae   :  { %v797_v0 = vrot.slane %v796_v28, 1 }
 0x3b0   :  { %v798_v26 = vadd.f32 %v797_v0, %v796_v28 }
 0x3b2   :  { %v806_v11 = vmul.f32 %v848_v27, %v798_v26 }
 0x3b4   :  { %v807_v4 = vadd.f32 %v806_v11, %v802_v32 }
 0x3b6   :  { %v817_v29 = vadd.f32 %v816_v42, %v807_v4 }
 0x3b8   :  { %818 = vst [vmem:[#allocation2] sm:$0x1] %v817_v29 }
 0x3b9   :  { %829 = dma.vmem_to_hbm [thread:$0]  %s825_s6, 16, %s827_s9, [#allocation3]  }
 0x3ba   :  { %997 = dma.done.wait [#allocation3], 16  }
 0x3bb   :  { %998 = vsyncadd [#allocation3], 4294967280 }
 0x3bc   :  { %834 = vsyncpa [#allocation3], 1 }

</bundles_post_ra>
